<compile_context>
chip_gen: v7x
topology: tpu7x:2x2x1
jax: 0.10.0
libtpu: 0.0.40
codegen_flags: <defaults>
</compile_context>

<pallas_src>
import functools

import jax
import jax.numpy as jnp
from jax.experimental import pallas as pl
from jax.experimental.pallas import tpu as pltpu

LN_EPS = 1e-5


def _round_up(n, m):
    return ((n + m - 1) // m) * m


def _ln_relu(h, gamma, beta):
    # LayerNorm over the last axis (biased variance, eps=1e-5) + ReLU,
    # matching torch.nn.LayerNorm followed by F.relu. Single-pass statistics
    # (fine in fp32 for post-matmul activations of this size).
    mean = jnp.mean(h, axis=-1, keepdims=True)
    mean_sq = jnp.mean(h * h, axis=-1, keepdims=True)
    var = mean_sq - mean * mean
    y = (h - mean) * jax.lax.rsqrt(var + LN_EPS) * gamma + beta
    return jnp.maximum(y, 0.0)


def ppo_kernel(x_ref,
               w1_ref, b1_ref, g1_ref, be1_ref,
               w2_ref, b2_ref, g2_ref, be2_ref,
               w3_ref, b3_ref, g3_ref, be3_ref,
               wht_ref, bht_ref,
               out_ref):
    # fc1 -> LN -> relu  (MXU operands in weight dtype, fp32 accumulation)
    h = jnp.dot(x_ref[...], w1_ref[...],
                preferred_element_type=jnp.float32) + b1_ref[...]
    h = _ln_relu(h, g1_ref[...], be1_ref[...])

    # fc2 -> LN -> relu
    h = jnp.dot(h.astype(w2_ref.dtype), w2_ref[...],
                preferred_element_type=jnp.float32) + b2_ref[...]
    h = _ln_relu(h, g2_ref[...], be2_ref[...])

    # fc3 -> LN -> relu
    h = jnp.dot(h.astype(w3_ref.dtype), w3_ref[...],
                preferred_element_type=jnp.float32) + b3_ref[...]
    h = _ln_relu(h, g3_ref[...], be3_ref[...])

    # Fused (policy | value) head, emitted transposed as a tiny lane-dense
    # (8, tile_b) slab: out[n, b] = sum_d wh_t[n, d] * h[b, d].
    out_t = jax.lax.dot_general(
        wht_ref[...], h.astype(wht_ref.dtype),
        dimension_numbers=(((1,), (1,)), ((), ())),
        preferred_element_type=jnp.float32)
    out_ref[...] = (out_t + bht_ref[...]).astype(out_ref.dtype)


def init_ppo_params(key, input_dim, output_dim=4, dtype=jnp.float32):
    """Deterministic synthetic params (PyTorch-default-like uniform init)."""
    def linear(key, fan_in, fan_out):
        kw, kb = jax.random.split(key)
        bound = 1.0 / jnp.sqrt(jnp.asarray(fan_in, jnp.float32))
        w = jax.random.uniform(kw, (fan_in, fan_out), dtype, -bound, bound)
        b = jax.random.uniform(kb, (1, fan_out), dtype, -bound, bound)
        return w, b

    keys = jax.random.split(key, 5)
    w1, b1 = linear(keys[0], input_dim, 256)
    w2, b2 = linear(keys[1], 256, 128)
    w3, b3 = linear(keys[2], 128, 64)
    wp, bp = linear(keys[3], 64, output_dim)
    wv, bv = linear(keys[4], 64, 1)

    # LayerNorm affine params: gamma=1, beta=0 (torch defaults).
    g1, be1 = jnp.ones((1, 256), dtype), jnp.zeros((1, 256), dtype)
    g2, be2 = jnp.ones((1, 128), dtype), jnp.zeros((1, 128), dtype)
    g3, be3 = jnp.ones((1, 64), dtype), jnp.zeros((1, 64), dtype)

    return (w1, b1, g1, be1,
            w2, b2, g2, be2,
            w3, b3, g3, be3,
            wp, bp, wv, bv)


def prepare_ppo_params(params, mxu_dtype=jnp.bfloat16):
    """One-time, out-of-jit param prep for the fused kernel.

    Builds the fused transposed head weight [8, 64] (rows output_dim+1..7
    zero-padded) + bias [8, 1] and optionally casts the MXU weight operands
    to bf16 (default).  Biases and LayerNorm params stay fp32.
    """
    (w1, b1, g1, be1, w2, b2, g2, be2, w3, b3, g3, be3,
     wp, bp, wv, bv) = params
    nh = wp.shape[1] + 1                       # policy logits + value
    rows = _round_up(nh, 8)                    # 8 sublanes for the head slab
    wh_t = jnp.pad(jnp.concatenate([wp, wv], axis=1).T,
                   ((0, rows - nh), (0, 0)))   # [rows, 64]
    bh_t = jnp.pad(jnp.concatenate([bp, bv], axis=1).T,
                   ((0, rows - nh), (0, 0)))   # [rows, 1]
    if mxu_dtype is not None:
        w1, w2, w3, wh_t = (w.astype(mxu_dtype) for w in (w1, w2, w3, wh_t))
    return (w1, b1, g1, be1, w2, b2, g2, be2, w3, b3, g3, be3, wh_t, bh_t)


def _select_tile(B, tile_b):
    """Pick (batch tile, padded batch).  tile is a multiple of 128 whenever
    grid > 1 (lane-dense transposed output) and is capped so grid >= 2 for
    large B (keeps both v7x TensorCores busy)."""
    tile_b = max(128, _round_up(tile_b, 128))
    b8 = _round_up(B, 8)
    if b8 <= 512:
        tb = b8                                 # small batch: one tile
    elif b8 <= tile_b:
        tb = _round_up(-(-B // 2), 128)         # grid == 2 for v7x megacore
    else:
        tb = tile_b
    return tb, _round_up(b8, tb)


@functools.partial(jax.jit, static_argnames=("output_dim", "tile_b"))
def ppo_forward(x, kparams, *, output_dim=4, tile_b=1024):
    """Fused PPO forward. Returns (policy [B, output_dim], value [B, 1]).

    kparams: output of prepare_ppo_params (MXU weights fp32 or bf16).
    tile_b:  batch tile (default 1024, rounded to a multiple of 128).
    """
    w1 = kparams[0]
    rows = kparams[-1].shape[0]                 # fused head rows (8)
    B, Din = x.shape
    x = x.astype(w1.dtype)                      # MXU operand dtype

    tb, Bp = _select_tile(B, tile_b)
    if Bp != B:
        x = jnp.pad(x, ((0, Bp - B), (0, 0)))
    grid = (Bp // tb,)

    # Params: full-block, constant index_map -> fetched once, VMEM-resident.
    param_specs = [pl.BlockSpec(p.shape, lambda i: (0, 0)) for p in kparams]

    out_t = pl.pallas_call(
        ppo_kernel,
        out_shape=jax.ShapeDtypeStruct((rows, Bp), jnp.float32),
        grid_spec=pltpu.PrefetchScalarGridSpec(
            num_scalar_prefetch=0,
            grid=grid,
            in_specs=[pl.BlockSpec((tb, Din), lambda i: (i, 0))] + param_specs,
            out_specs=pl.BlockSpec((rows, tb), lambda i: (0, i)),
        ),
        compiler_params=pltpu.CompilerParams(
            dimension_semantics=("parallel",)),
    )(x, *kparams)

    # Single cheap pass over the tiny (rows, Bp) slab; transpose back to the
    # PyTorch (B, output_dim) / (B, 1) layout.
    policy = out_t[:output_dim, :B].T
    value = out_t[output_dim:output_dim + 1, :B].T
    return policy, value


def ppo_forward_ref(x, params):
    (w1, b1, g1, be1, w2, b2, g2, be2, w3, b3, g3, be3,
     wp, bp, wv, bv) = params

    def ln_relu(h, g, be):
        mean = jnp.mean(h, axis=-1, keepdims=True)
        var = jnp.mean((h - mean) ** 2, axis=-1, keepdims=True)
        return jnp.maximum((h - mean) * jax.lax.rsqrt(var + LN_EPS) * g + be, 0.0)

    h = ln_relu(x @ w1 + b1, g1, be1)
    h = ln_relu(h @ w2 + b2, g2, be2)
    h = ln_relu(h @ w3 + b3, g3, be3)
    return h @ wp + bp, h @ wv + bv


if __name__ == "__main__":
    key = jax.random.PRNGKey(0)
    k_param, k_x1, k_x2, k_x3 = jax.random.split(key, 4)

    input_dim, output_dim = 32, 4
    params = init_ppo_params(k_param, input_dim, output_dim)

    kparams_f32 = prepare_ppo_params(params, mxu_dtype=None)    # exact path
    kparams_bf16 = prepare_ppo_params(params)                   # default path

    # Small batch: single tile, no padding (fp32 MXU path, exact numerics).
    x_small = jax.random.normal(k_x1, (8, input_dim), jnp.float32)
    policy, value = ppo_forward(x_small, kparams_f32, output_dim=output_dim)
    jax.block_until_ready((policy, value))
    p_ref, v_ref = ppo_forward_ref(x_small, params)
    assert policy.shape == (8, output_dim) and value.shape == (8, 1)
    assert jnp.allclose(policy, p_ref, atol=1e-4, rtol=1e-4)
    assert jnp.allclose(value, v_ref, atol=1e-4, rtol=1e-4)

    # Non-8-multiple batch: exercises batch padding (still a single tile).
    x_mid = jax.random.normal(k_x2, (300, input_dim), jnp.float32)
    policy, value = ppo_forward(x_mid, kparams_f32, output_dim=output_dim)
    jax.block_until_ready((policy, value))
    p_ref, v_ref = ppo_forward_ref(x_mid, params)
    assert policy.shape == (300, output_dim) and value.shape == (300, 1)
    assert jnp.allclose(policy, p_ref, atol=1e-4, rtol=1e-4)
    assert jnp.allclose(value, v_ref, atol=1e-4, rtol=1e-4)

    # Larger batch: grid >= 2 (v7x megacore path), default bf16 MXU operands.
    x_big = jax.random.normal(k_x3, (600, input_dim), jnp.float32)
    p_bf, v_bf = ppo_forward(x_big, kparams_bf16, output_dim=output_dim)
    jax.block_until_ready((p_bf, v_bf))
    p_ref, v_ref = ppo_forward_ref(x_big, params)
    assert p_bf.shape == (600, output_dim) and v_bf.shape == (600, 1)
    assert jnp.allclose(p_bf, p_ref, atol=1e-1, rtol=1e-1)
    assert jnp.allclose(v_bf, v_ref, atol=1e-1, rtol=1e-1)

    # Same shape on the fp32 path: exact check of the multi-tile path.
    p32, v32 = ppo_forward(x_big, kparams_f32, output_dim=output_dim)
    jax.block_until_ready((p32, v32))
    assert jnp.allclose(p32, p_ref, atol=1e-4, rtol=1e-4)
    assert jnp.allclose(v32, v_ref, atol=1e-4, rtol=1e-4)

    print("KERNEL_OK")
</pallas_src>

<mosaic_0001>
module attributes {stable_mosaic.version = 11 : i64} {
  func.func @ppo_kernel(%arg0: i32, %arg1: memref<8x32xf32, #tpu.memory_space<vmem>>, %arg2: memref<32x256xf32, #tpu.memory_space<vmem>>, %arg3: memref<1x256xf32, #tpu.memory_space<vmem>>, %arg4: memref<1x256xf32, #tpu.memory_space<vmem>>, %arg5: memref<1x256xf32, #tpu.memory_space<vmem>>, %arg6: memref<256x128xf32, #tpu.memory_space<vmem>>, %arg7: memref<1x128xf32, #tpu.memory_space<vmem>>, %arg8: memref<1x128xf32, #tpu.memory_space<vmem>>, %arg9: memref<1x128xf32, #tpu.memory_space<vmem>>, %arg10: memref<128x64xf32, #tpu.memory_space<vmem>>, %arg11: memref<1x64xf32, #tpu.memory_space<vmem>>, %arg12: memref<1x64xf32, #tpu.memory_space<vmem>>, %arg13: memref<1x64xf32, #tpu.memory_space<vmem>>, %arg14: memref<8x64xf32, #tpu.memory_space<vmem>>, %arg15: memref<8x1xf32, #tpu.memory_space<vmem>>, %arg16: memref<8x8xf32, #tpu.memory_space<vmem>>) attributes {dimension_semantics = [#tpu.dimension_semantics<parallel>], iteration_bounds = array<i64: 1>, scalar_prefetch = 0 : i64, scratch_operands = 0 : i64, tpu.core_type = #tpu.core_type<tc>, window_params = [{transform_indices = @transform_0, window_bounds = array<i64: 8, 32>}, {pipeline_mode = #tpu.pipeline_mode<synchronous>, transform_indices = @transform_1, window_bounds = array<i64: 32, 256>}, {pipeline_mode = #tpu.pipeline_mode<synchronous>, transform_indices = @transform_2, window_bounds = array<i64: 1, 256>}, {pipeline_mode = #tpu.pipeline_mode<synchronous>, transform_indices = @transform_3, window_bounds = array<i64: 1, 256>}, {pipeline_mode = #tpu.pipeline_mode<synchronous>, transform_indices = @transform_4, window_bounds = array<i64: 1, 256>}, {pipeline_mode = #tpu.pipeline_mode<synchronous>, transform_indices = @transform_5, window_bounds = array<i64: 256, 128>}, {pipeline_mode = #tpu.pipeline_mode<synchronous>, transform_indices = @transform_6, window_bounds = array<i64: 1, 128>}, {pipeline_mode = #tpu.pipeline_mode<synchronous>, transform_indices = @transform_7, window_bounds = array<i64: 1, 128>}, {pipeline_mode = #tpu.pipeline_mode<synchronous>, transform_indices = @transform_8, window_bounds = array<i64: 1, 128>}, {pipeline_mode = #tpu.pipeline_mode<synchronous>, transform_indices = @transform_9, window_bounds = array<i64: 128, 64>}, {pipeline_mode = #tpu.pipeline_mode<synchronous>, transform_indices = @transform_10, window_bounds = array<i64: 1, 64>}, {pipeline_mode = #tpu.pipeline_mode<synchronous>, transform_indices = @transform_11, window_bounds = array<i64: 1, 64>}, {pipeline_mode = #tpu.pipeline_mode<synchronous>, transform_indices = @transform_12, window_bounds = array<i64: 1, 64>}, {pipeline_mode = #tpu.pipeline_mode<synchronous>, transform_indices = @transform_13, window_bounds = array<i64: 8, 64>}, {pipeline_mode = #tpu.pipeline_mode<synchronous>, transform_indices = @transform_14, window_bounds = array<i64: 8, 1>}, {transform_indices = @transform_15, window_bounds = array<i64: 8, 8>}]} {
    %c0 = arith.constant 0 : index
    %c0_0 = arith.constant 0 : index
    %0 = vector.load %arg1[%c0, %c0_0] : memref<8x32xf32, #tpu.memory_space<vmem>>, vector<8x32xf32>
    %c0_1 = arith.constant 0 : index
    %c0_2 = arith.constant 0 : index
    %1 = vector.load %arg2[%c0_1, %c0_2] : memref<32x256xf32, #tpu.memory_space<vmem>>, vector<32x256xf32>
    %cst = arith.constant dense<0.000000e+00> : vector<8x256xf32>
    %2 = tpu.matmul %0, %1, %cst {dimension_numbers = #tpu.dot_dimension_numbers<[1], [0], [0], [1], [0, 0, 1, 1], [], []>} : vector<8x32xf32>, vector<32x256xf32>, vector<8x256xf32> -> vector<8x256xf32>
    %c0_3 = arith.constant 0 : index
    %c0_4 = arith.constant 0 : index
    %3 = vector.load %arg3[%c0_3, %c0_4] : memref<1x256xf32, #tpu.memory_space<vmem>>, vector<1x256xf32>
    %4 = vector.broadcast %3 : vector<1x256xf32> to vector<8x256xf32>
    %5 = arith.addf %2, %4 : vector<8x256xf32>
    %c0_5 = arith.constant 0 : index
    %c0_6 = arith.constant 0 : index
    %6 = vector.load %arg4[%c0_5, %c0_6] : memref<1x256xf32, #tpu.memory_space<vmem>>, vector<1x256xf32>
    %c0_7 = arith.constant 0 : index
    %c0_8 = arith.constant 0 : index
    %7 = vector.load %arg5[%c0_7, %c0_8] : memref<1x256xf32, #tpu.memory_space<vmem>>, vector<1x256xf32>
    %cst_9 = arith.constant dense<0.000000e+00> : vector<8xf32>
    %8 = vector.multi_reduction <add>, %5, %cst_9 [1] : vector<8x256xf32> to vector<8xf32>
    %9 = vector.shape_cast %8 : vector<8xf32> to vector<8x1xf32>
    %cst_10 = arith.constant 2.560000e+02 : f32
    %10 = vector.broadcast %cst_10 : f32 to vector<8x1xf32>
    %11 = arith.divf %9, %10 : vector<8x1xf32>
    %12 = arith.mulf %5, %5 : vector<8x256xf32>
    %cst_11 = arith.constant dense<0.000000e+00> : vector<8xf32>
    %13 = vector.multi_reduction <add>, %12, %cst_11 [1] : vector<8x256xf32> to vector<8xf32>
    %14 = vector.shape_cast %13 : vector<8xf32> to vector<8x1xf32>
    %cst_12 = arith.constant 2.560000e+02 : f32
    %15 = vector.broadcast %cst_12 : f32 to vector<8x1xf32>
    %16 = arith.divf %14, %15 : vector<8x1xf32>
    %17 = arith.mulf %11, %11 : vector<8x1xf32>
    %18 = arith.subf %16, %17 : vector<8x1xf32>
    %19 = vector.broadcast %11 : vector<8x1xf32> to vector<8x256xf32>
    %20 = arith.subf %5, %19 : vector<8x256xf32>
    %cst_13 = arith.constant 9.99999974E-6 : f32
    %21 = vector.broadcast %cst_13 : f32 to vector<8x1xf32>
    %22 = arith.addf %18, %21 : vector<8x1xf32>
    %23 = math.rsqrt %22 : vector<8x1xf32>
    %24 = vector.broadcast %23 : vector<8x1xf32> to vector<8x256xf32>
    %25 = arith.mulf %20, %24 : vector<8x256xf32>
    %26 = vector.broadcast %6 : vector<1x256xf32> to vector<8x256xf32>
    %27 = arith.mulf %25, %26 : vector<8x256xf32>
    %28 = vector.broadcast %7 : vector<1x256xf32> to vector<8x256xf32>
    %29 = arith.addf %27, %28 : vector<8x256xf32>
    %cst_14 = arith.constant 0.000000e+00 : f32
    %30 = vector.broadcast %cst_14 : f32 to vector<8x256xf32>
    %31 = arith.maximumf %29, %30 : vector<8x256xf32>
    %c0_15 = arith.constant 0 : index
    %c0_16 = arith.constant 0 : index
    %32 = vector.load %arg6[%c0_15, %c0_16] : memref<256x128xf32, #tpu.memory_space<vmem>>, vector<256x128xf32>
    %cst_17 = arith.constant dense<0.000000e+00> : vector<8x128xf32>
    %33 = tpu.matmul %31, %32, %cst_17 {dimension_numbers = #tpu.dot_dimension_numbers<[1], [0], [0], [1], [0, 0, 1, 1], [], []>} : vector<8x256xf32>, vector<256x128xf32>, vector<8x128xf32> -> vector<8x128xf32>
    %c0_18 = arith.constant 0 : index
    %c0_19 = arith.constant 0 : index
    %34 = vector.load %arg7[%c0_18, %c0_19] : memref<1x128xf32, #tpu.memory_space<vmem>>, vector<1x128xf32>
    %35 = vector.broadcast %34 : vector<1x128xf32> to vector<8x128xf32>
    %36 = arith.addf %33, %35 : vector<8x128xf32>
    %c0_20 = arith.constant 0 : index
    %c0_21 = arith.constant 0 : index
    %37 = vector.load %arg8[%c0_20, %c0_21] : memref<1x128xf32, #tpu.memory_space<vmem>>, vector<1x128xf32>
    %c0_22 = arith.constant 0 : index
    %c0_23 = arith.constant 0 : index
    %38 = vector.load %arg9[%c0_22, %c0_23] : memref<1x128xf32, #tpu.memory_space<vmem>>, vector<1x128xf32>
    %cst_24 = arith.constant dense<0.000000e+00> : vector<8xf32>
    %39 = vector.multi_reduction <add>, %36, %cst_24 [1] : vector<8x128xf32> to vector<8xf32>
    %40 = vector.shape_cast %39 : vector<8xf32> to vector<8x1xf32>
    %cst_25 = arith.constant 1.280000e+02 : f32
    %41 = vector.broadcast %cst_25 : f32 to vector<8x1xf32>
    %42 = arith.divf %40, %41 : vector<8x1xf32>
    %43 = arith.mulf %36, %36 : vector<8x128xf32>
    %cst_26 = arith.constant dense<0.000000e+00> : vector<8xf32>
    %44 = vector.multi_reduction <add>, %43, %cst_26 [1] : vector<8x128xf32> to vector<8xf32>
    %45 = vector.shape_cast %44 : vector<8xf32> to vector<8x1xf32>
    %cst_27 = arith.constant 1.280000e+02 : f32
    %46 = vector.broadcast %cst_27 : f32 to vector<8x1xf32>
    %47 = arith.divf %45, %46 : vector<8x1xf32>
    %48 = arith.mulf %42, %42 : vector<8x1xf32>
    %49 = arith.subf %47, %48 : vector<8x1xf32>
    %50 = vector.broadcast %42 : vector<8x1xf32> to vector<8x128xf32>
    %51 = arith.subf %36, %50 : vector<8x128xf32>
    %cst_28 = arith.constant 9.99999974E-6 : f32
    %52 = vector.broadcast %cst_28 : f32 to vector<8x1xf32>
    %53 = arith.addf %49, %52 : vector<8x1xf32>
    %54 = math.rsqrt %53 : vector<8x1xf32>
    %55 = vector.broadcast %54 : vector<8x1xf32> to vector<8x128xf32>
    %56 = arith.mulf %51, %55 : vector<8x128xf32>
    %57 = vector.broadcast %37 : vector<1x128xf32> to vector<8x128xf32>
    %58 = arith.mulf %56, %57 : vector<8x128xf32>
    %59 = vector.broadcast %38 : vector<1x128xf32> to vector<8x128xf32>
    %60 = arith.addf %58, %59 : vector<8x128xf32>
    %cst_29 = arith.constant 0.000000e+00 : f32
    %61 = vector.broadcast %cst_29 : f32 to vector<8x128xf32>
    %62 = arith.maximumf %60, %61 : vector<8x128xf32>
    %c0_30 = arith.constant 0 : index
    %c0_31 = arith.constant 0 : index
    %63 = vector.load %arg10[%c0_30, %c0_31] : memref<128x64xf32, #tpu.memory_space<vmem>>, vector<128x64xf32>
    %cst_32 = arith.constant dense<0.000000e+00> : vector<8x64xf32>
    %64 = tpu.matmul %62, %63, %cst_32 {dimension_numbers = #tpu.dot_dimension_numbers<[1], [0], [0], [1], [0, 0, 1, 1], [], []>} : vector<8x128xf32>, vector<128x64xf32>, vector<8x64xf32> -> vector<8x64xf32>
    %c0_33 = arith.constant 0 : index
    %c0_34 = arith.constant 0 : index
    %65 = vector.load %arg11[%c0_33, %c0_34] : memref<1x64xf32, #tpu.memory_space<vmem>>, vector<1x64xf32>
    %66 = vector.broadcast %65 : vector<1x64xf32> to vector<8x64xf32>
    %67 = arith.addf %64, %66 : vector<8x64xf32>
    %c0_35 = arith.constant 0 : index
    %c0_36 = arith.constant 0 : index
    %68 = vector.load %arg12[%c0_35, %c0_36] : memref<1x64xf32, #tpu.memory_space<vmem>>, vector<1x64xf32>
    %c0_37 = arith.constant 0 : index
    %c0_38 = arith.constant 0 : index
    %69 = vector.load %arg13[%c0_37, %c0_38] : memref<1x64xf32, #tpu.memory_space<vmem>>, vector<1x64xf32>
    %cst_39 = arith.constant dense<0.000000e+00> : vector<8xf32>
    %70 = vector.multi_reduction <add>, %67, %cst_39 [1] : vector<8x64xf32> to vector<8xf32>
    %71 = vector.shape_cast %70 : vector<8xf32> to vector<8x1xf32>
    %cst_40 = arith.constant 6.400000e+01 : f32
    %72 = vector.broadcast %cst_40 : f32 to vector<8x1xf32>
    %73 = arith.divf %71, %72 : vector<8x1xf32>
    %74 = arith.mulf %67, %67 : vector<8x64xf32>
    %cst_41 = arith.constant dense<0.000000e+00> : vector<8xf32>
    %75 = vector.multi_reduction <add>, %74, %cst_41 [1] : vector<8x64xf32> to vector<8xf32>
    %76 = vector.shape_cast %75 : vector<8xf32> to vector<8x1xf32>
    %cst_42 = arith.constant 6.400000e+01 : f32
    %77 = vector.broadcast %cst_42 : f32 to vector<8x1xf32>
    %78 = arith.divf %76, %77 : vector<8x1xf32>
    %79 = arith.mulf %73, %73 : vector<8x1xf32>
    %80 = arith.subf %78, %79 : vector<8x1xf32>
    %81 = vector.broadcast %73 : vector<8x1xf32> to vector<8x64xf32>
    %82 = arith.subf %67, %81 : vector<8x64xf32>
    %cst_43 = arith.constant 9.99999974E-6 : f32
    %83 = vector.broadcast %cst_43 : f32 to vector<8x1xf32>
    %84 = arith.addf %80, %83 : vector<8x1xf32>
    %85 = math.rsqrt %84 : vector<8x1xf32>
    %86 = vector.broadcast %85 : vector<8x1xf32> to vector<8x64xf32>
    %87 = arith.mulf %82, %86 : vector<8x64xf32>
    %88 = vector.broadcast %68 : vector<1x64xf32> to vector<8x64xf32>
    %89 = arith.mulf %87, %88 : vector<8x64xf32>
    %90 = vector.broadcast %69 : vector<1x64xf32> to vector<8x64xf32>
    %91 = arith.addf %89, %90 : vector<8x64xf32>
    %cst_44 = arith.constant 0.000000e+00 : f32
    %92 = vector.broadcast %cst_44 : f32 to vector<8x64xf32>
    %93 = arith.maximumf %91, %92 : vector<8x64xf32>
    %c0_45 = arith.constant 0 : index
    %c0_46 = arith.constant 0 : index
    %94 = vector.load %arg14[%c0_45, %c0_46] : memref<8x64xf32, #tpu.memory_space<vmem>>, vector<8x64xf32>
    %cst_47 = arith.constant dense<0.000000e+00> : vector<8x8xf32>
    %95 = tpu.matmul %94, %93, %cst_47 {dimension_numbers = #tpu.dot_dimension_numbers<[1], [1], [0], [0], [0, 0, 1, 0], [], []>} : vector<8x64xf32>, vector<8x64xf32>, vector<8x8xf32> -> vector<8x8xf32>
    %c0_48 = arith.constant 0 : index
    %c0_49 = arith.constant 0 : index
    %96 = vector.load %arg15[%c0_48, %c0_49] : memref<8x1xf32, #tpu.memory_space<vmem>>, vector<8x1xf32>
    %97 = vector.broadcast %96 : vector<8x1xf32> to vector<8x8xf32>
    %98 = arith.addf %95, %97 : vector<8x8xf32>
    %c0_50 = arith.constant 0 : index
    %c0_51 = arith.constant 0 : index
    %99 = vector.load %arg16[%c0_50, %c0_51] : memref<8x8xf32, #tpu.memory_space<vmem>>, vector<8x8xf32>
    tpu.vector_store %arg16[%c0_50, %c0_51], %98 {strides = array<i32>} : memref<8x8xf32, #tpu.memory_space<vmem>>, vector<8x8xf32>,
    return
  }
  func.func @transform_0(%arg0: i32) -> (i32, i32) {
    %c0_i32 = arith.constant 0 : i32
    %c0_i32_0 = arith.constant 0 : i32
    return %arg0, %c0_i32 : i32, i32
  }
  func.func @transform_1(%arg0: i32) -> (i32, i32) {
    %c0_i32 = arith.constant 0 : i32
    %c0_i32_0 = arith.constant 0 : i32
    %c0_i32_1 = arith.constant 0 : i32
    return %c0_i32, %c0_i32_0 : i32, i32
  }
  func.func @transform_2(%arg0: i32) -> (i32, i32) {
    %c0_i32 = arith.constant 0 : i32
    %c0_i32_0 = arith.constant 0 : i32
    %c0_i32_1 = arith.constant 0 : i32
    return %c0_i32, %c0_i32_0 : i32, i32
  }
  func.func @transform_3(%arg0: i32) -> (i32, i32) {
    %c0_i32 = arith.constant 0 : i32
    %c0_i32_0 = arith.constant 0 : i32
    %c0_i32_1 = arith.constant 0 : i32
    return %c0_i32, %c0_i32_0 : i32, i32
  }
  func.func @transform_4(%arg0: i32) -> (i32, i32) {
    %c0_i32 = arith.constant 0 : i32
    %c0_i32_0 = arith.constant 0 : i32
    %c0_i32_1 = arith.constant 0 : i32
    return %c0_i32, %c0_i32_0 : i32, i32
  }
  func.func @transform_5(%arg0: i32) -> (i32, i32) {
    %c0_i32 = arith.constant 0 : i32
    %c0_i32_0 = arith.constant 0 : i32
    %c0_i32_1 = arith.constant 0 : i32
    return %c0_i32, %c0_i32_0 : i32, i32
  }
  func.func @transform_6(%arg0: i32) -> (i32, i32) {
    %c0_i32 = arith.constant 0 : i32
    %c0_i32_0 = arith.constant 0 : i32
    %c0_i32_1 = arith.constant 0 : i32
    return %c0_i32, %c0_i32_0 : i32, i32
  }
  func.func @transform_7(%arg0: i32) -> (i32, i32) {
    %c0_i32 = arith.constant 0 : i32
    %c0_i32_0 = arith.constant 0 : i32
    %c0_i32_1 = arith.constant 0 : i32
    return %c0_i32, %c0_i32_0 : i32, i32
  }
  func.func @transform_8(%arg0: i32) -> (i32, i32) {
    %c0_i32 = arith.constant 0 : i32
    %c0_i32_0 = arith.constant 0 : i32
    %c0_i32_1 = arith.constant 0 : i32
    return %c0_i32, %c0_i32_0 : i32, i32
  }
  func.func @transform_9(%arg0: i32) -> (i32, i32) {
    %c0_i32 = arith.constant 0 : i32
    %c0_i32_0 = arith.constant 0 : i32
    %c0_i32_1 = arith.constant 0 : i32
    return %c0_i32, %c0_i32_0 : i32, i32
  }
  func.func @transform_10(%arg0: i32) -> (i32, i32) {
    %c0_i32 = arith.constant 0 : i32
    %c0_i32_0 = arith.constant 0 : i32
    %c0_i32_1 = arith.constant 0 : i32
    return %c0_i32, %c0_i32_0 : i32, i32
  }
  func.func @transform_11(%arg0: i32) -> (i32, i32) {
    %c0_i32 = arith.constant 0 : i32
    %c0_i32_0 = arith.constant 0 : i32
    %c0_i32_1 = arith.constant 0 : i32
    return %c0_i32, %c0_i32_0 : i32, i32
  }
  func.func @transform_12(%arg0: i32) -> (i32, i32) {
    %c0_i32 = arith.constant 0 : i32
    %c0_i32_0 = arith.constant 0 : i32
    %c0_i32_1 = arith.constant 0 : i32
    return %c0_i32, %c0_i32_0 : i32, i32
  }
  func.func @transform_13(%arg0: i32) -> (i32, i32) {
    %c0_i32 = arith.constant 0 : i32
    %c0_i32_0 = arith.constant 0 : i32
    %c0_i32_1 = arith.constant 0 : i32
    return %c0_i32, %c0_i32_0 : i32, i32
  }
  func.func @transform_14(%arg0: i32) -> (i32, i32) {
    %c0_i32 = arith.constant 0 : i32
    %c0_i32_0 = arith.constant 0 : i32
    %c0_i32_1 = arith.constant 0 : i32
    return %c0_i32, %c0_i32_0 : i32, i32
  }
  func.func @transform_15(%arg0: i32) -> (i32, i32) {
    %c0_i32 = arith.constant 0 : i32
    %c0_i32_0 = arith.constant 0 : i32
    return %c0_i32, %arg0 : i32, i32
  }
}

</mosaic_0001>

<bundles_post_ra>
// kernel: ppo_forward.1
= control target key start
LH: loop header
LB: loop body
LE: loop exit
PB: predicated region body
PF: predicated region fallthrough
CT: control target
= control target key end

     0   :  { %20 = vsyncpa [#allocation3], 0  ;;  %s771_s18 = smov [#allocation2]   ;;  %s1011_s0 = inlined_call_operand.vmem [shape: f32[8,32], index: 0, kind: input, shape index: {}]   ;;  %s1012_s1 = inlined_call_operand.vmem [shape: f32[32,256], index: 1, kind: input, shape index: {}]   ;;  %s1013_s2 = inlined_call_operand.vmem [shape: f32[1,256], index: 2, kind: input, shape index: {}]   ;;  %s1014_s3 = inlined_call_operand.vmem [shape: f32[1,256], index: 3, kind: input, shape index: {}]   ;;  %s1015_s4 = inlined_call_operand.vmem [shape: f32[1,256], index: 4, kind: input, shape index: {}]   ;;  %s1016_s5 = inlined_call_operand.hbm [shape: f32[256,128], index: 5, kind: input, shape index: {}]   ;;  %s1017_s6 = inlined_call_operand.vmem [shape: f32[1,128], index: 6, kind: input, shape index: {}]   ;;  %s1018_s7 = inlined_call_operand.vmem [shape: f32[1,128], index: 7, kind: input, shape index: {}]   ;;  %s1019_s8 = inlined_call_operand.vmem [shape: f32[1,128], index: 8, kind: input, shape index: {}]   ;;  %s1020_s9 = inlined_call_operand.vmem [shape: f32[128,64], index: 9, kind: input, shape index: {}]   ;;  %s1021_s10 = inlined_call_operand.vmem [shape: f32[1,64], index: 10, kind: input, shape index: {}]   ;;  %s1022_s11 = inlined_call_operand.vmem [shape: f32[1,64], index: 11, kind: input, shape index: {}]   ;;  %s1023_s12 = inlined_call_operand.vmem [shape: f32[1,64], index: 12, kind: input, shape index: {}]   ;;  %s1024_s13 = inlined_call_operand.vmem [shape: f32[8,64], index: 13, kind: input, shape index: {}]   ;;  %s1025_s14 = inlined_call_operand.vmem [shape: f32[8,1], index: 14, kind: input, shape index: {}]   ;;  %s1026_s15 = inlined_call_operand.vmem [shape: f32[8,8], index: 15, kind: output, shape index: {}]  }
   0x1   :  { %s36_s19 = sshll.u32 %s771_s18, 4  ;;  %s747_s22 = scalar_lea.hbm %s1016_s5, 4096  ;;  %s37_s19 = int_to_ptr.vmem [resolvable:$true] %s36_s19 }
   0x2   :  { %p748_p0 = scmp.ne.s32.totalorder %s1016_s5, %s747_s22  ;;  %p751_p1 = scmp.lt.u32.totalorder %s747_s22, %s1016_s5 }
   0x4   :  { %p753_p2 = pnand %p751_p1, %p748_p0 }
   0x6   :  { %756 = shalt.err (!%p753_p2)
}
   0x7   :  { %s757_s27 = scalar_lea.vmem %s37_s19, 4096  ;;  %p762_p4 = scmp.lt.s32.totalorder %s37_s19, %s37_s19 }
   0x8   :  { %p758_p3 = scmp.ne.s32.totalorder %s37_s19, %s757_s27  ;;  %p763_p5 = scmp.lt.s32.totalorder %s757_s27, %s757_s27 }
   0xa   :  { %p764_p6 = por %p763_p5, %p762_p4 }
   0xc   :  { %p765_p7 = pnand %p764_p6, %p758_p3 }
   0xe   :  { %768 = shalt.err (!%p765_p7)
}
   0xf   :  { %s772_s28 = smov 128   ;;  %s773_s29 = smov 8  }
  0x10   :  { %42 = dma.hbm_to_vmem [thread:$0]  %s1016_s5, 4096, %s37_s19, [#allocation3], %s772_s28, %s772_s28, %s773_s29  }
  0x11   :  { %769 = dma.done.wait [#allocation3], 4096  }
  0x12   :  { %770 = vsyncadd [#allocation3], 4294963200  ;;  %v774_v0 = vmov 0.0   ;;  %v66_v1 = vld [vmem:[%s1012_s1 + $0x8] sm:$0xff]  ;;  %v68_v2 = vld [vmem:[%s1012_s1 + $0x18] sm:$0xff]  ;;  %vm85_vm0 = vcmask 261120   ;;  %v75_v20 = vlaneseq }
  0x13   :  { %153 = vmatprep.mubr.f32.mxu0 %v774_v0  ;;  %v65_v3 = vld [vmem:[%s1012_s1] sm:$0xff]  ;;  %v669_v4 = vpack.c.bf16 %v68_v2, %v66_v1  ;;  %v67_v5 = vld [vmem:[%s1012_s1 + $0x10] sm:$0xff]  ;;  %v70_v6 = vld [vmem:[%s1012_s1 + $0x28] sm:$0xff]  ;;  %vm776_vm1 = vmmov 0   ;;  %vm444_vm2 = vcmask 523264   ;;  %vm559_vm3 = vcmask 64512  }
  0x14   :  { %v72_v7 = vld [vmem:[%s1012_s1 + $0x38] sm:$0xff]  ;;  %v671_v8 = vpack.c.bf16 %v67_v5, %v65_v3  ;;  %v69_v10 = vld [vmem:[%s1012_s1 + $0x20] sm:$0xff]  ;;  %v71_v11 = vld [vmem:[%s1012_s1 + $0x30] sm:$0xff]  ;;  %v76_v21 = vshrl.u32 %v75_v20, 7 }
  0x15   :  { %v673_v9 = vpack.c.bf16 %v72_v7, %v70_v6  ;;  %670 = vmatprep.subr.bf16.mxu0 %v669_v4  ;;  %v675_v12 = vpack.c.bf16 %v71_v11, %v69_v10  ;;  %v64_v13 = vld [vmem:[%s1011_s0] sm:$0xff]  ;;  %v226_v15 = vld [vmem:[#allocation2 + $0x88] sm:$0xff]  ;;  %v227_v35 = vld [vmem:[#allocation2 + $0x90] sm:$0xff] }
  0x16   :  { %672 = vmatpush1.bf16.msra.mxu0 %v671_v8  ;;  %v225_v14 = vld [vmem:[#allocation2 + $0x80] sm:$0xff]  ;;  %v210_v18 = vld [vmem:[#allocation2 + $0x8] sm:$0xff]  ;;  %v898_v22 = vsub.s32 0, %v76_v21  ;;  %v903_v24 = vsub.s32 1, %v76_v21  ;;  %v228_v36 = vld [vmem:[#allocation2 + $0x98] sm:$0xff] }
  0x17   :  { %674 = vmatprep.subr.bf16.mxu0 %v673_v9  ;;  %v209_v16 = vld [vmem:[#allocation2] sm:$0xff]  ;;  %v677_v17 = vpack.c.bf16 %v226_v15, %v225_v14  ;;  %v681_v37 = vpack.c.bf16 %v228_v36, %v227_v35  ;;  %v211_v38 = vld [vmem:[#allocation2 + $0x10] sm:$0xff]  ;;  %v212_v39 = vld [vmem:[#allocation2 + $0x18] sm:$0xff] }
  0x18   :  { %v679_v19 = vpack.c.bf16 %v210_v18, %v209_v16  ;;  %v73_v23 = vld [vmem:[%s1013_s2] sm:$0x3]  ;;  %v683_v40 = vpack.c.bf16 %v212_v39, %v211_v38  ;;  %v230_v42 = vld [vmem:[#allocation2 + $0xa8] sm:$0xff]  ;;  %v231_v47 = vld [vmem:[#allocation2 + $0xb0] sm:$0xff] }
  0x19   :  { %678 = vmatprep.subr.bf16.mxu1 %v677_v17  ;;  %v78_v25 = vrot.slane %v73_v23, %v898_v22  ;;  %v82_v26 = vrot.slane %v73_v23, %v903_v24  ;;  %v229_v41 = vld [vmem:[#allocation2 + $0xa0] sm:$0xff]  ;;  %v214_v45 = vld [vmem:[#allocation2 + $0x28] sm:$0xff]  ;;  %v232_v48 = vld [vmem:[#allocation2 + $0xb8] sm:$0xff] }
  0x1a   :  { %676 = vmatpush1.bf16.msra.mxu0 %v675_v12  ;;  %680 = vmatpush3.bf16.msra.mxu1 %v679_v19  ;;  %v685_v43 = vpack.c.bf16 %v230_v42, %v229_v41  ;;  %v213_v44 = vld [vmem:[#allocation2 + $0x20] sm:$0xff]  ;;  %v689_v49 = vpack.c.bf16 %v232_v48, %v231_v47  ;;  %v215_v50 = vld [vmem:[#allocation2 + $0x30] sm:$0xff]  ;;  %v216_v51 = vld [vmem:[#allocation2 + $0x38] sm:$0xff] }
  0x1b   :  { %682 = vmatprep.subr.bf16.mxu1 %v681_v37  ;;  %v687_v46 = vpack.c.bf16 %v214_v45, %v213_v44  ;;  %v691_v52 = vpack.c.bf16 %v216_v51, %v215_v50  ;;  %v233_v53 = vld [vmem:[#allocation2 + $0xc0] sm:$0xff]  ;;  %v234_v54 = vld [vmem:[#allocation2 + $0xc8] sm:$0xff]  ;;  %v235_v58 = vld [vmem:[#allocation2 + $0xd0] sm:$0xff] }
  0x1c   :  { %v217_v55 = vld [vmem:[#allocation2 + $0x40] sm:$0xff]  ;;  %v693_v56 = vpack.c.bf16 %v234_v54, %v233_v53  ;;  %v218_v57 = vld [vmem:[#allocation2 + $0x48] sm:$0xff]  ;;  %v236_v59 = vld [vmem:[#allocation2 + $0xd8] sm:$0xff] }
  0x1d   :  { %566 = vmatmul.mubr.msk.f32.vlgmr.msra.gmra.mrb[0].mxu0 %vm85_vm0, %v64_v13  ;;  %v695_v60 = vpack.c.bf16 %v218_v57, %v217_v55  ;;  %v697_v61 = vpack.c.bf16 %v236_v59, %v235_v58  ;;  %v219_v62 = vld [vmem:[#allocation2 + $0x50] sm:$0xff]  ;;  %v220_v63 = vld [vmem:[#allocation2 + $0x58] sm:$0xff]  ;;  %v237_v1 = vld [vmem:[#allocation2 + $0xe0] sm:$0xff] }
  0x1e   :  { %684 = vmatpush3.bf16.msra.mxu1 %v683_v40  ;;  %v238_v2 = vld [vmem:[#allocation2 + $0xe8] sm:$0xff]  ;;  %v699_v3 = vpack.c.bf16 %v220_v63, %v219_v62  ;;  %v221_v5 = vld [vmem:[#allocation2 + $0x60] sm:$0xff]  ;;  %v239_v7 = vld [vmem:[#allocation2 + $0xf0] sm:$0xff]  ;;  %661 = vmatprep.mubr.msk.f32.mxu0 %vm776_vm1, %v774_v0 }
  0x1f   :  { %686 = vmatprep.subr.bf16.mxu1 %v685_v43  ;;  %v701_v4 = vpack.c.bf16 %v238_v2, %v237_v1  ;;  %v222_v6 = vld [vmem:[#allocation2 + $0x68] sm:$0xff]  ;;  %v240_v8 = vld [vmem:[#allocation2 + $0xf8] sm:$0xff]  ;;  %v223_v11 = vld [vmem:[#allocation2 + $0x70] sm:$0xff] }
  0x20   :  { %v703_v9 = vpack.c.bf16 %v222_v6, %v221_v5  ;;  %v705_v10 = vpack.c.bf16 %v240_v8, %v239_v7  ;;  %v224_v12 = vld [vmem:[#allocation2 + $0x78] sm:$0xff]  ;;  %v160_v21 = vld [vmem:[%s1014_s3] sm:$0x3]  ;;  %v351_v48 = vld [vmem:[%s1020_s9 + $0x10] sm:$0xff] }
  0x21   :  { %v707_v13 = vpack.c.bf16 %v224_v12, %v223_v11  ;;  %v161_v23 = vld [vmem:[%s1015_s4] sm:$0x3]  ;;  %v355_v54 = vld [vmem:[%s1020_s9 + $0x30] sm:$0xff]  ;;  %v356_v55 = vld [vmem:[%s1020_s9 + $0x38] sm:$0xff] }
  0x22   :  { %688 = vmatpush3.bf16.msra.mxu1 %v687_v46  ;;  %v567_v43 = vld [vmem:[%s1017_s6] ss:$0 sm:$0xff]  ;;  %v358_v58 = vld [vmem:[%s1020_s9 + $0x48] sm:$0xff] }
  0x23   :  { %690 = vmatprep.subr.bf16.mxu1 %v689_v49  ;;  %v352_v49 = vld [vmem:[%s1020_s9 + $0x18] sm:$0xff]  ;;  %v353_v51 = vld [vmem:[%s1020_s9 + $0x20] sm:$0xff]  ;;  %v362_v1 = vld [vmem:[%s1020_s9 + $0x68] sm:$0xff] }
  0x24   :  { %v713_v50 = vpack.c.bf16 %v352_v49, %v351_v48  ;;  %v357_v57 = vld [vmem:[%s1020_s9 + $0x40] sm:$0xff] }
  0x25   :  { %v722_v59 = vpack.c.bf16 %v358_v58, %v357_v57  ;;  %v361_v63 = vld [vmem:[%s1020_s9 + $0x60] sm:$0xff] }
  0x26   :  { %692 = vmatpush3.bf16.msra.mxu1 %v691_v52  ;;  %v354_v52 = vld [vmem:[%s1020_s9 + $0x28] sm:$0xff]  ;;  %v728_v2 = vpack.c.bf16 %v362_v1, %v361_v63 }
  0x27   :  { %694 = vmatprep.subr.bf16.mxu1 %v693_v56  ;;  %v716_v53 = vpack.c.bf16 %v354_v52, %v353_v51  ;;  %v719_v56 = vpack.c.bf16 %v356_v55, %v355_v54 }
  0x2a   :  { %696 = vmatpush3.bf16.msra.mxu1 %v695_v60  ;;  %v359_v60 = vld [vmem:[%s1020_s9 + $0x50] sm:$0xff] }
  0x2b   :  { %698 = vmatprep.subr.bf16.mxu1 %v697_v61  ;;  %v360_v61 = vld [vmem:[%s1020_s9 + $0x58] sm:$0xff] }
  0x2c   :  { %v725_v62 = vpack.c.bf16 %v360_v61, %v359_v60 }
  0x2e   :  { %700 = vmatpush3.bf16.msra.mxu1 %v699_v3  ;;  %v363_v3 = vld [vmem:[%s1020_s9 + $0x70] sm:$0xff] }
  0x2f   :  { %702 = vmatprep.subr.bf16.mxu1 %v701_v4 }
  0x32   :  { %704 = vmatpush3.bf16.msra.mxu1 %v703_v9 }
  0x33   :  { %706 = vmatprep.subr.bf16.mxu1 %v705_v10 }
  0x36   :  { %708 = vmatpush3.bf16.msra.mxu1 %v707_v13 }
  0x37   :  { %664 = vmatprep.subr.mxu1 %v774_v0 }
  0xf0   :  { %v155_v27 = vpop.f32.mrb[0].mxu0 }
  0xf1   :  { %v907_v28 = vadd.f32 %v155_v27, %v78_v25  ;;  %v157_v29 = vpop.f32.mrb[1].mxu0  ;;  %v185_v27 = vrot.slane %v160_v21, %v898_v22 }
  0xf2   :  { %v909_v30 = vadd.f32 %v157_v29, %v82_v26  ;;  %v189_v29 = vrot.slane %v160_v21, %v903_v24 }
  0xf3   :  { %v167_v32 = vmul.f32 %v907_v28, %v907_v28 }
  0xf4   :  { %v162_v31 = vadd.f32 %v909_v30, %v907_v28  ;;  %v168_v33 = vmul.f32 %v909_v30, %v909_v30 }
  0xf6   :  { %163 = vadd.xlane.f32.xlu0 %v162_v31  ;;  %v169_v34 = vadd.f32 %v168_v33, %v167_v32  ;;  %v198_v33 = vrot.slane %v161_v23, %v898_v22  ;;  %v775_v22 = vmov 0.0|0.0  }
  0xf7   :  { %709 = vmatprep.subr.bf16.mxu0 %v775_v22 }
  0xfa   :  { %170 = vadd.xlane.f32.xlu0 %v169_v34  ;;  %v202_v34 = vrot.slane %v161_v23, %v903_v24 }
 0x183   :  { %v164_v14 = vpop.xlane.xlu0 %163 }
 0x184   :  { %v166_v15 = vmul.f32 0.00390625, %v164_v14  ;;  %v568_v14 = vld [vmem:[%s1018_s7] ss:$0 sm:$0xff] }
 0x186   :  { %v173_v17 = vmul.f32 %v166_v15, %v166_v15  ;;  %v175_v25 = vsub.f32 %v907_v28, %v166_v15  ;;  %v176_v26 = vsub.f32 %v909_v30, %v166_v15  ;;  %v349_v28 = vld [vmem:[%s1020_s9] sm:$0xff]  ;;  %v350_v30 = vld [vmem:[%s1020_s9 + $0x8] sm:$0xff] }
 0x187   :  { %v171_v16 = vpop.xlane.xlu0 %170  ;;  %v710_v24 = vpack.c.bf16 %v350_v30, %v349_v28  ;;  %v571_v28 = vld [vmem:[%s1022_s11] ss:$0 sm:$0xff] }
 0x188   :  { %v172_v18 = vmul.f32 0.00390625, %v171_v16  ;;  %v569_v16 = vld [vmem:[%s1019_s8] ss:$0 sm:$0xff] }
 0x189   :  { %711 = vmatpush3.bf16.msra.mxu0 %v710_v24 }
 0x18a   :  { %v174_v19 = vsub.f32 %v172_v18, %v173_v17  ;;  %712 = vmatprep.subr.bf16.mxu0 %v775_v22 }
 0x18c   :  { %v177_v20 = vadd.f32 1e-05, %v174_v19 }
 0x18d   :  { %714 = vmatpush3.bf16.msra.mxu0 %v713_v50 }
 0x18e   :  { %741 = vrsqrt.f32 %v177_v20  ;;  %715 = vmatprep.subr.bf16.mxu0 %v775_v22  ;;  %v570_v20 = vld [vmem:[%s1021_s10] ss:$0 sm:$0xff] }
 0x191   :  { %717 = vmatpush3.bf16.msra.mxu0 %v716_v53 }
 0x192   :  { %718 = vmatprep.subr.bf16.mxu0 %v775_v22 }
 0x195   :  { %720 = vmatpush3.bf16.msra.mxu0 %v719_v56 }
 0x196   :  { %721 = vmatprep.subr.bf16.mxu0 %v775_v22 }
 0x198   :  { %v742_v31 = vpop.eup %741 }
 0x199   :  { %v180_v32 = vmul.f32 %v742_v31, %v176_v26  ;;  %v179_v35 = vmul.f32 %v742_v31, %v175_v25  ;;  %723 = vmatpush3.bf16.msra.mxu0 %v722_v59  ;;  %v477_v31 = vld [vmem:[%s1025_s14] sm:$0xff] }
 0x19a   :  { %724 = vmatprep.subr.bf16.mxu0 %v775_v22 }
 0x19b   :  { %v193_v36 = vmul.f32 %v189_v29, %v180_v32  ;;  %v192_v37 = vmul.f32 %v185_v27, %v179_v35  ;;  %v777_v32 = vmov 0  }
 0x19c   :  { %740 = vset.pattern.permute.xlu0 %v777_v32 }
 0x19d   :  { %v206_v38 = vadd.f32 %v202_v34, %v193_v36  ;;  %v205_v39 = vadd.f32 %v198_v33, %v192_v37  ;;  %726 = vmatpush3.bf16.msra.mxu0 %v725_v62 }
 0x19e   :  { %727 = vmatprep.subr.bf16.mxu0 %v775_v22 }
 0x19f   :  { %v208_v40 = vmax.f32 %v206_v38, 0.0  ;;  %v207_v41 = vmax.f32 %v205_v39, 0.0 }
 0x1a1   :  { %312 = vmatprep.mubr.f32.mxu1 %v208_v40  ;;  %729 = vmatpush3.bf16.msra.mxu0 %v728_v2 }
 0x1a2   :  { %313 = vmatmul.mubr.f32.vlgmr.msra.gmra.mrb[0].mxu1 %v207_v41  ;;  %730 = vmatprep.subr.bf16.mxu0 %v775_v22  ;;  %v572_v22 = vld [vmem:[%s1023_s12] ss:$0 sm:$0xff] }
 0x1a3   :  { %666 = vmatprep.mubr.msk.f32.mxu1 %vm776_vm1, %v774_v0  ;;  %v364_v0 = vld [vmem:[%s1020_s9 + $0x78] sm:$0xff] }
 0x1a4   :  { %v731_v4 = vpack.c.bf16 %v364_v0, %v363_v3 }
 0x1a6   :  { %732 = vmatpush3.bf16.msra.mxu0 %v731_v4 }
 0x275   :  { %v607_v42 = vpop.f32.mrb[0].mxu1 }
 0x276   :  { %v608_v44 = vpop.f32.mrb[1].mxu1 }
 0x277   :  { %v609_v45 = vadd.f32 %v608_v44, %v607_v42  ;;  %v476_v44 = vld [vmem:[%s1024_s13] sm:$0xff] }
 0x279   :  { %v315_v46 = vadd.f32 %v609_v45, %v567_v43 }
 0x27b   :  { %320 = vadd.xlane.f32.xlu1 %v315_v46  ;;  %v324_v47 = vmul.f32 %v315_v46, %v315_v46 }
 0x27f   :  { %325 = vadd.xlane.f32.xlu1 %v324_v47 }
 0x308   :  { %v321_v5 = vpop.xlane.xlu1 %320 }
 0x309   :  { %v323_v6 = vmul.f32 0.0078125, %v321_v5 }
 0x30b   :  { %v328_v8 = vmul.f32 %v323_v6, %v323_v6  ;;  %v330_v12 = vsub.f32 %v315_v46, %v323_v6 }
 0x30c   :  { %v326_v7 = vpop.xlane.xlu1 %325 }
 0x30d   :  { %v327_v9 = vmul.f32 0.0078125, %v326_v7 }
 0x30f   :  { %v329_v10 = vsub.f32 %v327_v9, %v328_v8 }
 0x311   :  { %v331_v11 = vadd.f32 1e-05, %v329_v10 }
 0x313   :  { %743 = vrsqrt.f32 %v331_v11 }
 0x31d   :  { %v744_v13 = vpop.eup %743 }
 0x31e   :  { %v333_v15 = vmul.f32 %v744_v13, %v330_v12 }
 0x320   :  { %v340_v17 = vmul.f32 %v568_v14, %v333_v15 }
 0x322   :  { %v347_v18 = vadd.f32 %v569_v16, %v340_v17 }
 0x324   :  { %v348_v19 = vmax.f32 %v347_v18, 0.0 }
 0x326   :  { %662 = vmatmul.mubr.f32.vlgmr.msra.gmra.mrb[2].mxu0 %v348_v19 }
 0x3f9   :  { %v438_v21 = vpop.f32.mrb[2].mxu0 }
 0x3fa   :  { %v439_v23 = vadd.f32 %v570_v20, %v438_v21  ;;  %v663_v25 = vpop.f32.mrb[3].mxu0 }
 0x3fc   :  { %v445_v26 = vsel %vm444_vm2, %v439_v23, 0.0  ;;  %v450_v27 = vmul.f32 %v439_v23, %v439_v23 }
 0x3fd   :  { %446 = vadd.xlane.f32.xlu0 %v445_v26 }
 0x3fe   :  { %v451_v29 = vsel %vm444_vm2, %v450_v27, 0.0 }
 0x3ff   :  { %452 = vadd.xlane.f32.xlu1 %v451_v29 }
 0x413   :  { %480 = vperm.xlu0 %740, %v477_v31  }
 0x48a   :  { %v447_v33 = vpop.xlane.xlu0 %446 }
 0x48b   :  { %v449_v34 = vmul.f32 0.015625, %v447_v33 }
 0x48c   :  { %v453_v35 = vpop.xlane.xlu1 %452 }
 0x48d   :  { %v455_v36 = vmul.f32 %v449_v34, %v449_v34  ;;  %v454_v37 = vmul.f32 0.015625, %v453_v35  ;;  %v457_v40 = vsub.f32 %v439_v23, %v449_v34 }
 0x48f   :  { %v456_v38 = vsub.f32 %v454_v37, %v455_v36 }
 0x491   :  { %v458_v39 = vadd.f32 1e-05, %v456_v38 }
 0x492   :  { %v481_v45 = vpop.permute.xlu0 %480 }
 0x493   :  { %745 = vrsqrt.f32 %v458_v39 }
 0x49d   :  { %v746_v41 = vpop.eup %745 }
 0x49e   :  { %v460_v30 = vmul.f32 %v746_v41, %v457_v40 }
 0x4a0   :  { %v467_v24 = vmul.f32 %v571_v28, %v460_v30 }
 0x4a2   :  { %v474_v42 = vadd.f32 %v572_v22, %v467_v24 }
 0x4a4   :  { %v475_v43 = vmax.f32 %v474_v42, 0.0 }
 0x4a6   :  { %665 = vmatpush3.xpose.msk.msra.mxu1 %vm444_vm2, %v475_v43 }
 0x4a9   :  { %667 = vmatmul.mubr.msk.f32.vlgmr.msra.gmra.mrb[2].mxu1 %vm444_vm2, %v476_v44 }
 0x57c   :  { %v555_v46 = vpop.f32.mrb[2].mxu1 }
 0x57d   :  { %v668_v47 = vpop.f32.mrb[3].mxu1  ;;  %v556_v48 = vadd.f32 %v555_v46, %v481_v45 }
 0x57f   :  { %560 = vst.msk [vmem:[%s1026_s15] sm:$0xff] %vm559_vm3, %v556_v48 }
 0x580   :  { %565 = vsyncpa [#allocation3], 1 }

</bundles_post_ra>
